<compile_context>
chip_gen: v7x
topology: tpu7x:2x2x1
jax: 0.10.0
libtpu: 0.0.40
codegen_flags: <defaults>
</compile_context>

<pallas_src>
import jax
import jax.numpy as jnp
from jax.experimental import pallas as pl
from jax.experimental.pallas import tpu as pltpu

ADAPTER_BOTTLENECK = 8   # config.ADAPTER_BOTTLENECK (synthetic)

_LANE = 128
_SUBLANE = 8


def _round_up(x, m):
    return ((x + m - 1) // m) * m


def _vmem_budgets():
    """Generation-aware (stream_budget, vmem_limit) in bytes."""
    cap = 64 * 1024 * 1024  # conservative fallback = v7x per-TC VMEM
    try:
        info = pltpu.get_tpu_info()
        cap = int(getattr(info, "vmem_capacity_bytes", cap))
    except Exception:
        pass
    # 48 MiB limit / 32 MiB stream budget on a 64 MiB part (v7x);
    # 96 MiB limit / 64 MiB stream budget on 128 MiB parts (v5e/v6e).
    vmem_limit = min((cap * 3) // 4, 96 * 1024 * 1024)
    stream_budget = (vmem_limit * 2) // 3
    return stream_budget, vmem_limit


def _pick_tile_m(m, hidden, bneck_pad, dtype_bytes, stream_budget):
    """Row-tile size: large enough to amortize the ~0.35us per-step overhead
    and hit the HBM roofline, small enough that (x tile + out tile, double
    buffered, in I/O dtype) + f32 intermediates + resident weights fit the
    smallest-generation VMEM budget."""
    # Resident (double-buffered) weights + biases, in I/O dtype, lane-padded.
    weight_bytes = 2 * 2 * hidden * bneck_pad * dtype_bytes \
        + 2 * (bneck_pad + hidden) * dtype_bytes
    # Per-element stream + intermediate bytes:
    #   x in (2 bufs) + out (2 bufs) at dtype_bytes, ~8 B of f32 intermediates,
    #   plus the narrow (TILE_M, bneck_pad) f32 hidden activation.
    per_row = hidden * (4 * dtype_bytes + 8) + bneck_pad * 8
    avail = max(stream_budget - weight_bytes, per_row * _SUBLANE)
    tile = int(min(2048, max(_SUBLANE, avail // per_row)))
    tile = max(_SUBLANE, (tile // _SUBLANE) * _SUBLANE)   # sublane multiple
    tile = min(tile, _round_up(m, _SUBLANE))              # no bigger than problem
    return tile


def adapter_kernel(x_ref, wd_ref, bd_ref, wu_ref, bu_ref, o_ref):
    """Fused adapter tile: down-proj -> bias -> ReLU -> up-proj -> bias -> residual."""
    x = x_ref[...]                                                    # (TILE_M, H), native dtype
    # Down projection (MXU), f32 accumulation; bneck dim is lane-padded to 128.
    h = jnp.dot(x, wd_ref[...], preferred_element_type=jnp.float32)  # (TILE_M, Bpad)
    h = jnp.maximum(h + bd_ref[...].astype(jnp.float32), 0.0)        # bias + ReLU
    # Up projection (MXU); operand in weight dtype, accumulate in f32.
    # NOTE: for bf16 weights, h is downcast to bf16 here (documented deviation
    # from an all-f32 PyTorch reference; exact for f32).
    y = jnp.dot(h.astype(wu_ref.dtype), wu_ref[...],
                preferred_element_type=jnp.float32)                  # (TILE_M, H)
    y = y + bu_ref[...].astype(jnp.float32)                          # up-proj bias (f32)
    if o_ref.dtype == jnp.float32:
        o_ref[...] = y + x.astype(jnp.float32)                       # f32 residual add
    else:
        # bf16 I/O: cast y down once, residual add in the native dtype
        # (no materialized f32 copy of the x tile).
        o_ref[...] = y.astype(o_ref.dtype) + x.astype(o_ref.dtype)


def adapter_forward(x, w_down, b_down, w_up, b_up, *, tile_m=None):
    """x: (batch, seq, hidden). Weights already (in, out); biases (1, out)."""
    batch, seq, hidden = x.shape
    bneck = w_down.shape[1]
    m = batch * seq
    x2d = x.reshape(m, hidden)

    # Zero-pad the bottleneck to a lane multiple (>=128).  Tiny weights, so
    # the extra HBM/VMEM is negligible; the (H, 8) weight was lane-padded to
    # (H, 128) in VMEM anyway.  Padded columns are exactly zero after
    # bias+ReLU and hit zero rows of w_up -> result unchanged.
    bneck_pad = max(_LANE, _round_up(bneck, _LANE))
    if bneck_pad != bneck:
        pad = bneck_pad - bneck
        w_down = jnp.pad(w_down, ((0, 0), (0, pad)))
        b_down = jnp.pad(b_down, ((0, 0), (0, pad)))
        w_up = jnp.pad(w_up, ((0, pad), (0, 0)))

    dtype_bytes = jnp.dtype(x.dtype).itemsize
    stream_budget, vmem_limit = _vmem_budgets()
    if tile_m is None:
        tile_m = _pick_tile_m(m, hidden, bneck_pad, dtype_bytes, stream_budget)

    # Ragged last tile is handled by Pallas partial-block semantics: the tail
    # rows beyond m are never written back, and the op is row-independent so
    # whatever is read there cannot contaminate real rows.
    grid = (pl.cdiv(m, tile_m),)

    out2d = pl.pallas_call(
        adapter_kernel,
        out_shape=jax.ShapeDtypeStruct((m, hidden), x.dtype),
        grid_spec=pltpu.PrefetchScalarGridSpec(
            num_scalar_prefetch=0,
            grid=grid,
            in_specs=[
                # streamed: one row-tile of x per grid step
                pl.BlockSpec((tile_m, hidden), lambda i: (i, 0)),
                # resident: tiny weights / biases, constant block index
                pl.BlockSpec((hidden, bneck_pad), lambda i: (0, 0)),
                pl.BlockSpec((1, bneck_pad), lambda i: (0, 0)),
                pl.BlockSpec((bneck_pad, hidden), lambda i: (0, 0)),
                pl.BlockSpec((1, hidden), lambda i: (0, 0)),
            ],
            out_specs=pl.BlockSpec((tile_m, hidden), lambda i: (i, 0)),
        ),
        # Row tiles are independent.
        # TODO(synk): verify with xprof that this shards across v7x's 2
        # TensorCores; if it stays on one TC, switch this axis to
        # pltpu.CORE_PARALLEL (HBM-bound kernel -> up to ~2x on v7x).
        compiler_params=pltpu.CompilerParams(
            dimension_semantics=("parallel",),
            vmem_limit_bytes=vmem_limit,
        ),
    )(x2d, w_down, b_down, w_up, b_up)

    return out2d.reshape(batch, seq, hidden)


def reference_forward(x, w_down, b_down, w_up, b_up):
    x = x.astype(jnp.float32)
    h = jnp.maximum(x @ w_down.astype(jnp.float32) + b_down[0].astype(jnp.float32), 0.0)
    return h @ w_up.astype(jnp.float32) + b_up[0].astype(jnp.float32) + x


if __name__ == "__main__":
    key = jax.random.PRNGKey(0)
    batch, seq, hidden = 2, 8, 32
    bneck = ADAPTER_BOTTLENECK

    k_x, k_wd, k_bd, k_wu, k_bu = jax.random.split(key, 5)
    x = jax.random.normal(k_x, (batch, seq, hidden), dtype=jnp.float32)

    # Deterministic param init (PyTorch Linear weight is (out,in); we store (in,out)).
    w_down = jax.random.normal(k_wd, (hidden, bneck), dtype=jnp.float32) * 0.05
    b_down = jax.random.normal(k_bd, (1, bneck), dtype=jnp.float32) * 0.05
    w_up = jax.random.normal(k_wu, (bneck, hidden), dtype=jnp.float32) * 0.05
    b_up = jax.random.normal(k_bu, (1, hidden), dtype=jnp.float32) * 0.05

    # --- f32, single tile ---
    out = jax.block_until_ready(adapter_forward(x, w_down, b_down, w_up, b_up))
    ref = reference_forward(x, w_down, b_down, w_up, b_up)
    assert out.shape == x.shape
    assert jnp.allclose(out, ref, atol=1e-5, rtol=1e-5), "mismatch vs reference (f32)"

    # --- f32, multi-tile with a ragged last tile (400 rows, tile_m=64) ---
    x_big = jax.random.normal(k_x, (4, 100, hidden), dtype=jnp.float32)
    out_big = jax.block_until_ready(
        adapter_forward(x_big, w_down, b_down, w_up, b_up, tile_m=64))
    ref_big = reference_forward(x_big, w_down, b_down, w_up, b_up)
    assert jnp.allclose(out_big, ref_big, atol=1e-5, rtol=1e-5), "mismatch (ragged tiled path)"

    # --- bf16 I/O path (residual add in bf16; looser tolerance) ---
    x_bf = x.astype(jnp.bfloat16)
    wd_bf, bd_bf = w_down.astype(jnp.bfloat16), b_down.astype(jnp.bfloat16)
    wu_bf, bu_bf = w_up.astype(jnp.bfloat16), b_up.astype(jnp.bfloat16)
    out_bf = jax.block_until_ready(adapter_forward(x_bf, wd_bf, bd_bf, wu_bf, bu_bf))
    ref_bf = reference_forward(x_bf, wd_bf, bd_bf, wu_bf, bu_bf)
    assert out_bf.dtype == jnp.bfloat16
    assert jnp.allclose(out_bf.astype(jnp.float32), ref_bf, atol=5e-2, rtol=5e-2), \
        "mismatch vs reference (bf16)"

    print("KERNEL_OK")
</pallas_src>

<mosaic_0001>
module attributes {stable_mosaic.version = 11 : i64} {
  func.func @adapter_kernel(%arg0: i32, %arg1: memref<16x32xf32, #tpu.memory_space<vmem>>, %arg2: memref<32x128xf32, #tpu.memory_space<vmem>>, %arg3: memref<1x128xf32, #tpu.memory_space<vmem>>, %arg4: memref<128x32xf32, #tpu.memory_space<vmem>>, %arg5: memref<1x32xf32, #tpu.memory_space<vmem>>, %arg6: memref<16x32xf32, #tpu.memory_space<vmem>>) attributes {dimension_semantics = [#tpu.dimension_semantics<parallel>], iteration_bounds = array<i64: 1>, scalar_prefetch = 0 : i64, scratch_operands = 0 : i64, tpu.core_type = #tpu.core_type<tc>, window_params = [{transform_indices = @transform_0, window_bounds = array<i64: 16, 32>}, {pipeline_mode = #tpu.pipeline_mode<synchronous>, transform_indices = @transform_1, window_bounds = array<i64: 32, 128>}, {pipeline_mode = #tpu.pipeline_mode<synchronous>, transform_indices = @transform_2, window_bounds = array<i64: 1, 128>}, {pipeline_mode = #tpu.pipeline_mode<synchronous>, transform_indices = @transform_3, window_bounds = array<i64: 128, 32>}, {pipeline_mode = #tpu.pipeline_mode<synchronous>, transform_indices = @transform_4, window_bounds = array<i64: 1, 32>}, {transform_indices = @transform_5, window_bounds = array<i64: 16, 32>}]} {
    %c0 = arith.constant 0 : index
    %c0_0 = arith.constant 0 : index
    %0 = vector.load %arg1[%c0, %c0_0] : memref<16x32xf32, #tpu.memory_space<vmem>>, vector<16x32xf32>
    %c0_1 = arith.constant 0 : index
    %c0_2 = arith.constant 0 : index
    %1 = vector.load %arg2[%c0_1, %c0_2] : memref<32x128xf32, #tpu.memory_space<vmem>>, vector<32x128xf32>
    %cst = arith.constant dense<0.000000e+00> : vector<16x128xf32>
    %2 = tpu.matmul %0, %1, %cst {dimension_numbers = #tpu.dot_dimension_numbers<[1], [0], [0], [1], [0, 0, 1, 1], [], []>} : vector<16x32xf32>, vector<32x128xf32>, vector<16x128xf32> -> vector<16x128xf32>
    %c0_3 = arith.constant 0 : index
    %c0_4 = arith.constant 0 : index
    %3 = vector.load %arg3[%c0_3, %c0_4] : memref<1x128xf32, #tpu.memory_space<vmem>>, vector<1x128xf32>
    %4 = vector.broadcast %3 : vector<1x128xf32> to vector<16x128xf32>
    %5 = arith.addf %2, %4 : vector<16x128xf32>
    %cst_5 = arith.constant 0.000000e+00 : f32
    %6 = vector.broadcast %cst_5 : f32 to vector<16x128xf32>
    %7 = arith.maximumf %5, %6 : vector<16x128xf32>
    %c0_6 = arith.constant 0 : index
    %c0_7 = arith.constant 0 : index
    %8 = vector.load %arg4[%c0_6, %c0_7] : memref<128x32xf32, #tpu.memory_space<vmem>>, vector<128x32xf32>
    %cst_8 = arith.constant dense<0.000000e+00> : vector<16x32xf32>
    %9 = tpu.matmul %7, %8, %cst_8 {dimension_numbers = #tpu.dot_dimension_numbers<[1], [0], [0], [1], [0, 0, 1, 1], [], []>} : vector<16x128xf32>, vector<128x32xf32>, vector<16x32xf32> -> vector<16x32xf32>
    %c0_9 = arith.constant 0 : index
    %c0_10 = arith.constant 0 : index
    %10 = vector.load %arg5[%c0_9, %c0_10] : memref<1x32xf32, #tpu.memory_space<vmem>>, vector<1x32xf32>
    %11 = vector.broadcast %10 : vector<1x32xf32> to vector<16x32xf32>
    %12 = arith.addf %9, %11 : vector<16x32xf32>
    %13 = arith.addf %12, %0 : vector<16x32xf32>
    %c0_11 = arith.constant 0 : index
    %c0_12 = arith.constant 0 : index
    %14 = vector.load %arg6[%c0_11, %c0_12] : memref<16x32xf32, #tpu.memory_space<vmem>>, vector<16x32xf32>
    tpu.vector_store %arg6[%c0_11, %c0_12], %13 {strides = array<i32>} : memref<16x32xf32, #tpu.memory_space<vmem>>, vector<16x32xf32>,
    return
  }
  func.func @transform_0(%arg0: i32) -> (i32, i32) {
    %c0_i32 = arith.constant 0 : i32
    %c0_i32_0 = arith.constant 0 : i32
    return %arg0, %c0_i32 : i32, i32
  }
  func.func @transform_1(%arg0: i32) -> (i32, i32) {
    %c0_i32 = arith.constant 0 : i32
    %c0_i32_0 = arith.constant 0 : i32
    %c0_i32_1 = arith.constant 0 : i32
    return %c0_i32, %c0_i32_0 : i32, i32
  }
  func.func @transform_2(%arg0: i32) -> (i32, i32) {
    %c0_i32 = arith.constant 0 : i32
    %c0_i32_0 = arith.constant 0 : i32
    %c0_i32_1 = arith.constant 0 : i32
    return %c0_i32, %c0_i32_0 : i32, i32
  }
  func.func @transform_3(%arg0: i32) -> (i32, i32) {
    %c0_i32 = arith.constant 0 : i32
    %c0_i32_0 = arith.constant 0 : i32
    %c0_i32_1 = arith.constant 0 : i32
    return %c0_i32, %c0_i32_0 : i32, i32
  }
  func.func @transform_4(%arg0: i32) -> (i32, i32) {
    %c0_i32 = arith.constant 0 : i32
    %c0_i32_0 = arith.constant 0 : i32
    %c0_i32_1 = arith.constant 0 : i32
    return %c0_i32, %c0_i32_0 : i32, i32
  }
  func.func @transform_5(%arg0: i32) -> (i32, i32) {
    %c0_i32 = arith.constant 0 : i32
    %c0_i32_0 = arith.constant 0 : i32
    return %arg0, %c0_i32 : i32, i32
  }
}

</mosaic_0001>

<bundles_post_ra>
// kernel: tpu_custom_call.1
= control target key start
LH: loop header
LB: loop body
LE: loop exit
PB: predicated region body
PF: predicated region fallthrough
CT: control target
= control target key end

     0   :  { %vm34_vm0 = vcmask 261120   ;;  %s502_s0 = inlined_call_operand.vmem [shape: f32[16,32], index: 0, kind: input, shape index: {}]   ;;  %s503_s1 = inlined_call_operand.vmem [shape: f32[32,128], index: 1, kind: input, shape index: {}]   ;;  %s504_s2 = inlined_call_operand.vmem [shape: f32[1,128], index: 2, kind: input, shape index: {}]   ;;  %s505_s3 = inlined_call_operand.vmem [shape: f32[128,32], index: 3, kind: input, shape index: {}]   ;;  %s506_s4 = inlined_call_operand.vmem [shape: f32[1,32], index: 4, kind: input, shape index: {}]   ;;  %s507_s5 = inlined_call_operand.hbm [shape: f32[16,32], index: 5, kind: output, shape index: {}]  }
   0x1   :  { %v23_v0 = vld [vmem:[%s503_s1] sm:$0xff]  ;;  %v24_v1 = vld [vmem:[%s503_s1 + $0x8] sm:$0xff]  ;;  %v25_v2 = vld [vmem:[%s503_s1 + $0x10] sm:$0xff] }
   0x2   :  { %v310_v3 = vpack.c.bf16 %v24_v1, %v23_v0  ;;  %v26_v4 = vld [vmem:[%s503_s1 + $0x18] sm:$0xff]  ;;  %v425_v5 = vld [vmem:[%s502_s0] sm:$0xff]  ;;  %v119_v8 = vld [vmem:[%s505_s3 + $0x8] sm:$0xff] }
   0x3   :  { %v314_v6 = vpack.c.bf16 %v26_v4, %v25_v2  ;;  %272 = vmatprep.mubr.msk.f32.mxu0 %vm34_vm0, %v425_v5  ;;  %v118_v7 = vld [vmem:[%s505_s3] sm:$0xff]  ;;  %v120_v9 = vld [vmem:[%s505_s3 + $0x10] sm:$0xff]  ;;  %v121_v11 = vld [vmem:[%s505_s3 + $0x18] sm:$0xff] }
   0x4   :  { %311 = vmatprep.subr.bf16.mxu0 %v310_v3  ;;  %v318_v10 = vpack.c.bf16 %v119_v8, %v118_v7  ;;  %v322_v12 = vpack.c.bf16 %v121_v11, %v120_v9  ;;  %v122_v13 = vld [vmem:[%s505_s3 + $0x20] sm:$0xff]  ;;  %v123_v14 = vld [vmem:[%s505_s3 + $0x28] sm:$0xff] }
   0x5   :  { %313 = vmatpush3.bf16.msra.mxu0 %v310_v3 }
   0x6   :  { %315 = vmatprep.subr.bf16.mxu0 %v314_v6  ;;  %319 = vmatprep.subr.bf16.mxu1 %v318_v10 }
   0x7   :  { %321 = vmatpush3.bf16.msra.mxu1 %v318_v10 }
   0x8   :  { %10 = vsyncpa [#allocation3], 0  ;;  %323 = vmatprep.subr.bf16.mxu1 %v322_v12  ;;  %v326_v15 = vpack.c.bf16 %v123_v14, %v122_v13  ;;  %v22_v16 = vld [vmem:[%s502_s0 + $0x8] sm:$0xff]  ;;  %v124_v17 = vld [vmem:[%s505_s3 + $0x30] sm:$0xff] }
   0x9   :  { %317 = vmatpush3.bf16.msra.mxu0 %v314_v6  ;;  %v125_v18 = vld [vmem:[%s505_s3 + $0x38] sm:$0xff]  ;;  %v126_v20 = vld [vmem:[%s505_s3 + $0x40] sm:$0xff]  ;;  %v127_v21 = vld [vmem:[%s505_s3 + $0x48] sm:$0xff] }
   0xa   :  { %v330_v19 = vpack.c.bf16 %v125_v18, %v124_v17  ;;  %v334_v22 = vpack.c.bf16 %v127_v21, %v126_v20  ;;  %v128_v23 = vld [vmem:[%s505_s3 + $0x50] sm:$0xff]  ;;  %v129_v24 = vld [vmem:[%s505_s3 + $0x58] sm:$0xff]  ;;  %v130_v26 = vld [vmem:[%s505_s3 + $0x60] sm:$0xff] }
   0xb   :  { %325 = vmatpush3.bf16.msra.mxu1 %v322_v12  ;;  %v338_v25 = vpack.c.bf16 %v129_v24, %v128_v23  ;;  %v131_v27 = vld [vmem:[%s505_s3 + $0x68] sm:$0xff]  ;;  %v132_v29 = vld [vmem:[%s505_s3 + $0x70] sm:$0xff]  ;;  %v133_v30 = vld [vmem:[%s505_s3 + $0x78] sm:$0xff]  ;;  %s377_s3 = smov [#allocation2]  }
   0xc   :  { %273 = vmatmul.mubr.msk.f32.vlgmr.msra.gmra.mrb[0].mxu0 %vm34_vm0, %v22_v16  ;;  %327 = vmatprep.subr.bf16.mxu1 %v326_v15  ;;  %v342_v28 = vpack.c.bf16 %v131_v27, %v130_v26  ;;  %v346_v31 = vpack.c.bf16 %v133_v30, %v132_v29  ;;  %v236_v32 = vld [vmem:[%s504_s2] ss:$0 sm:$0xff]  ;;  %s225_s13 = sshll.u32 %s377_s3, 4  ;;  %s226_s13 = int_to_ptr.vmem [resolvable:$true] %s225_s13 }
   0xd   :  { %v239_v39 = vld [vmem:[%s506_s4] ss:$0 sm:$0xff]  ;;  %s353_s2 = scalar_lea.vmem %s226_s13, 256  ;;  %p358_p1 = scmp.lt.s32.totalorder %s226_s13, %s226_s13 }
   0xe   :  { %p354_p0 = scmp.ne.s32.totalorder %s226_s13, %s353_s2  ;;  %p359_p2 = scmp.lt.s32.totalorder %s353_s2, %s353_s2 }
   0xf   :  { %329 = vmatpush3.bf16.msra.mxu1 %v326_v15 }
  0x10   :  { %331 = vmatprep.subr.bf16.mxu1 %v330_v19  ;;  %p360_p3 = por %p359_p2, %p358_p1 }
  0x12   :  { %p361_p4 = pnand %p360_p3, %p354_p0 }
  0x13   :  { %333 = vmatpush3.bf16.msra.mxu1 %v330_v19 }
  0x14   :  { %335 = vmatprep.subr.bf16.mxu1 %v334_v22 }
  0x17   :  { %337 = vmatpush3.bf16.msra.mxu1 %v334_v22 }
  0x18   :  { %339 = vmatprep.subr.bf16.mxu1 %v338_v25 }
  0x1b   :  { %341 = vmatpush3.bf16.msra.mxu1 %v338_v25 }
  0x1c   :  { %343 = vmatprep.subr.bf16.mxu1 %v342_v28 }
  0x1f   :  { %345 = vmatpush3.bf16.msra.mxu1 %v342_v28 }
  0x20   :  { %347 = vmatprep.subr.bf16.mxu1 %v346_v31 }
  0x23   :  { %349 = vmatpush3.bf16.msra.mxu1 %v346_v31 }
  0xdf   :  { %v274_v33 = vpop.f32.mrb[0].mxu0 }
  0xe0   :  { %v113_v34 = vadd.f32 %v274_v33, %v236_v32  ;;  %v107_v35 = vpop.f32.mrb[1].mxu0 }
  0xe1   :  { %v108_v36 = vadd.f32 %v236_v32, %v107_v35 }
  0xe2   :  { %v117_v38 = vmax.f32 %v113_v34, 0.0 }
  0xe3   :  { %v116_v37 = vmax.f32 %v108_v36, 0.0 }
  0xe5   :  { %307 = vmatprep.mubr.f32.mxu1 %v116_v37 }
  0xe6   :  { %308 = vmatmul.mubr.f32.vlgmr.msra.gmra.mrb[0].mxu1 %v117_v38 }
 0x1b9   :  { %v309_v40 = vpop.f32.mrb[0].mxu1 }
 0x1ba   :  { %v213_v41 = vadd.f32 %v309_v40, %v239_v39  ;;  %v207_v42 = vpop.f32.mrb[1].mxu1 }
 0x1bb   :  { %v208_v43 = vadd.f32 %v239_v39, %v207_v42 }
 0x1bc   :  { %v217_v44 = vadd.f32 %v213_v41, %v22_v16 }
 0x1bd   :  { %v216_v45 = vadd.f32 %v208_v43, %v425_v5 }
 0x1be   :  { %219 = vst.msk [vmem:[#allocation2 + $0x8] sm:$0xff] %vm34_vm0, %v217_v44 }
 0x1bf   :  { %218 = vst.msk [vmem:[#allocation2] sm:$0xff] %vm34_vm0, %v216_v45 }
 0x1c0   :  { %364 = shalt.err (!%p361_p4)
}
 0x1c1   :  { %s365_s15 = scalar_lea.hbm %s507_s5, 256 }
 0x1c2   :  { %p366_p5 = scmp.ne.s32.totalorder %s507_s5, %s365_s15  ;;  %p369_p6 = scmp.lt.u32.totalorder %s365_s15, %s507_s5 }
 0x1c4   :  { %p371_p7 = pnand %p369_p6, %p366_p5 }
 0x1c6   :  { %374 = shalt.err (!%p371_p7)
}
 0x1c7   :  { %s378_s20 = smov 128   ;;  %s379_s21 = smov 8  }
 0x1c8   :  { %231 = dma.vmem_to_hbm [thread:$0]  %s226_s13, 256, %s507_s5, [#allocation3], %s378_s20, %s378_s20, %s379_s21  }
 0x1c9   :  { %375 = dma.done.wait [#allocation3], 256  }
 0x1ca   :  { %376 = vsyncadd [#allocation3], 4294967040 }
 0x1cb   :  { %235 = vsyncpa [#allocation3], 1 }

</bundles_post_ra>
